<compile_context>
chip_gen: v7x
topology: tpu7x:2x2x1
jax: 0.10.0
libtpu: 0.0.40
codegen_flags: <defaults>
</compile_context>

<pallas_src>
from functools import partial

import jax
import jax.numpy as jnp
import numpy as np
from jax.experimental import pallas as pl
from jax.experimental.pallas import tpu as pltpu


def _ceil_div(a, b):
    return -(-a // b)


def cppn_kernel(ct_ref, z1_ref, wsp1t_ref, w2t_ref, b2t_ref, woutt_ref, o_ref,
                *, act_dtype):
    # ct_ref:    (3,  TN)  coord channels (X, Y, R) x pixels (lane = pixel axis), f32
    # z1_ref:    (H1, 1)   per-batch folded bias: (z @ Wz) @ W1 + b1, transposed, f32
    # wsp1t_ref: (H1, 3)   (Wsp[:3] @ W1)^T, f32
    # w2t_ref:   (H2, H1)  W2^T   (act_dtype)
    # b2t_ref:   (H2, 1)   b2^T   (f32)
    # woutt_ref: (C,  H2)  Wout^T (act_dtype)
    # o_ref:     (C,  TN)  lane-dense output tile (f32)
    ct = ct_ref[...]
    wsp = wsp1t_ref[...]
    # Folded input layer: the K=3 contraction is three VPU broadcast MACs instead of a
    # 3/256-deep MXU pass (avoids the relayout + MXU fill/drain; VALU slots have slack).
    pre1 = (wsp[:, 0:1] * ct[0:1, :]
            + wsp[:, 1:2] * ct[1:2, :]
            + wsp[:, 2:3] * ct[2:3, :]
            + z1_ref[...])                                             # (H1, TN) f32
    h1 = jnp.tanh(pre1.astype(act_dtype))                              # (H1, TN)
    pre2 = jnp.dot(w2t_ref[...], h1,
                   preferred_element_type=jnp.float32) + b2t_ref[...]  # (H2, TN) f32
    h2 = jnp.tanh(pre2.astype(act_dtype))                              # (H2, TN)
    pre_out = jnp.dot(woutt_ref[...], h2,
                      preferred_element_type=jnp.float32)              # (C, TN) f32
    out = jax.nn.sigmoid(pre_out.astype(act_dtype))
    o_ref[...] = out.astype(o_ref.dtype)


def _pick_tile_n(N, B, *, cap=8192, min_parallel_steps=4):
    """Pixel-axis tile: as large as possible (<= cap, a 128 multiple) to amortize the
    ~0.35 us per-grid-step overhead, while keeping at least `min_parallel_steps` total
    steps on the parallel grid axes so v7x megacore sharding has work even at B=1.
    Returns (tile_n, padded_N); padded_N is a multiple of tile_n (host pads with zeros)."""
    assert cap % 128 == 0
    steps_needed = max(1, _ceil_div(min_parallel_steps, max(B, 1)))
    target = min(cap, _ceil_div(N, steps_needed))
    tile_n = min(cap, max(128, _ceil_div(target, 128) * 128))
    n_pad = _ceil_div(N, tile_n) * tile_n
    return tile_n, n_pad


def cppn_forward(C_t, z, params, *, tile_n=None, act_dtype=jnp.float32,
                 channels_last=False):
    """CPPN forward, projection_config=None path.

    C_t: (B, 3, N) f32  — X, Y, R coordinate channels, pixel axis last (lane-dense).
    z:   (B, 1, dim_z) f32.
    params: (wsp, wz, w1, b1, w2, b2, wout) matching the PyTorch module
            (wsp stacks the six bias-free spatial Linear(1->H0) weights as (6, H0)).

    Returns channel-first (B, dim_c, N) by default — identical values to the PyTorch
    output, just transposed, avoiding an extra full-HBM-round-trip transpose.
    Pass channels_last=True for the exact PyTorch (B, N, dim_c) layout.

    act_dtype=jnp.bfloat16 enables the bf16 EUP/MXU fast path (v6e/v7x); default f32.

    Guard: the input-layer folding and the dropped null channels are only exact for
    projection_config=None (null coords are identically zero; spatial Linears have no bias).
    """
    wsp, wz, w1, b1, w2, b2, wout = params
    B, three, N = C_t.shape
    assert three == 3, "C_t must carry exactly the (X, Y, R) channels"
    assert wsp.shape[0] >= 3, "expected the 6 stacked spatial input weights (null rows unused)"
    H1 = w1.shape[1]
    H2 = w2.shape[1]
    dim_c = wout.shape[1]

    if tile_n is None:
        tile_n, n_pad = _pick_tile_n(N, B)
    else:
        assert tile_n % 128 == 0, "tile_n must be a multiple of 128 (lane width)"
        n_pad = _ceil_div(N, tile_n) * tile_n
    if n_pad != N:
        # Ragged pixel count: pad with zero coords, slice the output back below.
        C_t = jnp.pad(C_t, ((0, 0), (0, 0), (0, n_pad - N)))

    # Fold the bias-free linear input layer into hidden layer 1 (exact algebra):
    #   h1 = tanh(C @ Wsp[:3] @ W1 + (z @ Wz) @ W1 + b1)
    wsp1_t = jnp.transpose(wsp[:3] @ w1)                       # (H1, 3) f32
    z1_t = (z[:, 0, :] @ wz @ w1 + b1)[:, :, None]             # (B, H1, 1) f32
    w2_t = jnp.transpose(w2).astype(act_dtype)                 # (H2, H1)
    b2_t = jnp.transpose(b2)                                   # (H2, 1) f32
    wout_t = jnp.transpose(wout).astype(act_dtype)             # (dim_c, H2)

    grid = (B, n_pad // tile_n)

    def _full(arr):
        return pl.BlockSpec(arr.shape, lambda b, n, _nd=arr.ndim: (0,) * _nd)

    act_bytes = jnp.dtype(act_dtype).itemsize
    cost = pl.CostEstimate(
        flops=2 * B * n_pad * (3 * H1 + H1 * H2 + H2 * dim_c),
        transcendentals=B * n_pad * (H1 + H2 + dim_c),
        bytes_accessed=(4 * (C_t.size + B * dim_c * n_pad + z1_t.size
                             + wsp1_t.size + b2_t.size)
                        + act_bytes * (w2_t.size + wout_t.size)),
    )

    out_cf = pl.pallas_call(
        partial(cppn_kernel, act_dtype=act_dtype),
        out_shape=jax.ShapeDtypeStruct((B, dim_c, n_pad), jnp.float32),
        grid_spec=pltpu.PrefetchScalarGridSpec(
            num_scalar_prefetch=0,
            grid=grid,
            in_specs=[
                # coords tile: squeezed batch dim, lane-dense pixel axis
                pl.BlockSpec((None, 3, tile_n), lambda b, n: (b, 0, n)),
                # per-batch folded bias (z @ Wz @ W1 + b1)^T
                pl.BlockSpec((None, H1, 1), lambda b, n: (b, 0, 0)),
                _full(wsp1_t),                                           # (H1, 3)
                _full(w2_t),                                             # (H2, H1)
                _full(b2_t),                                             # (H2, 1)
                _full(wout_t),                                           # (dim_c, H2)
            ],
            out_specs=pl.BlockSpec((None, dim_c, tile_n), lambda b, n: (b, 0, n)),
        ),
        compiler_params=pltpu.CompilerParams(
            dimension_semantics=("parallel", "parallel"),
            # Explicit scoped-VMEM budget (raises v5e's 16 MiB default; per-step usage
            # at tile_n=8192 is only a few MiB, so this is generous on every generation).
            vmem_limit_bytes=32 * 1024 * 1024,
        ),
        cost_estimate=cost,
    )(C_t, z1_t, wsp1_t, w2_t, b2_t, wout_t)

    if n_pad != N:
        out_cf = out_cf[:, :, :N]
    if channels_last:
        # Exact PyTorch layout; costs one extra XLA transpose over HBM.
        return jnp.swapaxes(out_cf, 1, 2)
    return out_cf


def make_coords(scale, res, batch_size):
    """Spatial part of CPPN._coordinates.  Only [X, Y, R] are kept — the null channels
    are identically zero and multiply bias-free weights, so they contribute nothing.
    Pixel axis last (lane-dense)."""
    aspect_ratio = 1.0  # xres == yres
    xv = np.linspace(-scale, scale, res) * aspect_ratio
    yv = np.linspace(-scale, scale, res)
    X, Y = np.meshgrid(xv, yv)
    R = np.sqrt(X ** 2 + Y ** 2)
    Ct = np.stack([X.reshape(-1), Y.reshape(-1), R.reshape(-1)], axis=0)   # (3, N)
    Ct = np.broadcast_to(Ct[None], (batch_size,) + Ct.shape)
    return jnp.asarray(np.ascontiguousarray(Ct, dtype=np.float32))         # (B, 3, N)


def init_params(key, dim_in, dim_z, net_size, dim_c):
    """Deterministic synthetic init (shapes match the PyTorch module: six spatial
    Linear(1->H0, no bias) stacked as (6, H0), plus Linear(dim_z->H0, no bias))."""
    ks = jax.random.split(key, 8)
    H0, H1, H2 = net_size
    wsp = jax.random.normal(ks[0], (dim_in - 1, H0), jnp.float32)
    wz = jax.random.normal(ks[1], (dim_z, H0), jnp.float32) / np.sqrt(dim_z)
    w1 = jax.random.normal(ks[2], (H0, H1), jnp.float32) / np.sqrt(H0)
    b1 = jax.random.uniform(ks[3], (1, H1), jnp.float32, -1.0, 1.0) / np.sqrt(H0)
    w2 = jax.random.normal(ks[4], (H1, H2), jnp.float32) / np.sqrt(H1)
    b2 = jax.random.uniform(ks[5], (1, H2), jnp.float32, -1.0, 1.0) / np.sqrt(H1)
    wout = jax.random.normal(ks[6], (H2, dim_c), jnp.float32) / np.sqrt(H2)
    return (wsp, wz, w1, b1, w2, b2, wout)


def reference_forward(C_t, z, params):
    """Un-folded pure-JAX reference mirroring the PyTorch graph exactly
    (null channels contribute zero because their coordinates are zero)."""
    wsp, wz, w1, b1, w2, b2, wout = params
    C = jnp.swapaxes(C_t, 1, 2)                                   # (B, N, 3)
    U = C @ wsp[:3] + (z[:, 0, :] @ wz)[:, None, :]
    h1 = jnp.tanh(U @ w1 + b1)
    h2 = jnp.tanh(h1 @ w2 + b2)
    return jax.nn.sigmoid(h2 @ wout)                              # (B, N, dim_c)


if __name__ == "__main__":
    # Small shapes consistent with the module: res=16 -> N=256 pixels, batch=2,
    # dim_z=16, net_size=[32, 32, 32], dim_c=3, scale=5.
    B, res, scale = 2, 16, 5
    dim_z, dim_c = 16, 3
    net_size = [32, 32, 32]
    dim_in = 7  # 6 spatial coords + z

    key = jax.random.PRNGKey(0)
    k_params, k_z = jax.random.split(key)

    params = init_params(k_params, dim_in, dim_z, net_size, dim_c)
    C_t = make_coords(scale, res, B)                                 # (B, 3, 256)
    z = jax.random.normal(k_z, (B, 1, dim_z), jnp.float32)           # (B, 1, dim_z)

    N = res * res
    ref = jax.block_until_ready(reference_forward(C_t, z, params))   # (B, N, dim_c)

    # f32 path, channel-first public layout (no post-kernel transpose).
    out_cf = jax.block_until_ready(cppn_forward(C_t, z, params))
    assert out_cf.shape == (B, dim_c, N)
    np.testing.assert_allclose(np.asarray(out_cf),
                               np.asarray(jnp.swapaxes(ref, 1, 2)),
                               rtol=1e-5, atol=1e-5)

    # Exact PyTorch (B, N, dim_c) layout on request.
    out_cl = jax.block_until_ready(cppn_forward(C_t, z, params, channels_last=True))
    assert out_cl.shape == (B, N, dim_c)
    np.testing.assert_allclose(np.asarray(out_cl), np.asarray(ref), rtol=1e-5, atol=1e-5)

    # Ragged pixel count -> host-side zero pad to a 128 multiple, slice back.
    n_ragged = 200
    out_ragged = jax.block_until_ready(
        cppn_forward(C_t[:, :, :n_ragged], z, params, channels_last=True))
    assert out_ragged.shape == (B, n_ragged, dim_c)
    np.testing.assert_allclose(np.asarray(out_ragged),
                               np.asarray(ref[:, :n_ragged, :]),
                               rtol=1e-5, atol=1e-5)

    # Optional bf16 EUP/MXU fast path (v6e/v7x) — looser tolerance by design.
    out_bf16 = jax.block_until_ready(
        cppn_forward(C_t, z, params, act_dtype=jnp.bfloat16, channels_last=True))
    np.testing.assert_allclose(np.asarray(out_bf16), np.asarray(ref), rtol=0.0, atol=8e-2)

    print("KERNEL_OK")
</pallas_src>

<mosaic_0001>
module attributes {stable_mosaic.version = 11 : i64} {
  func.func @cppn_kernel(%arg0: i32, %arg1: i32, %arg2: memref<1x3x128xf32, #tpu.memory_space<vmem>>, %arg3: memref<1x32x1xf32, #tpu.memory_space<vmem>>, %arg4: memref<32x3xf32, #tpu.memory_space<vmem>>, %arg5: memref<32x32xf32, #tpu.memory_space<vmem>>, %arg6: memref<32x1xf32, #tpu.memory_space<vmem>>, %arg7: memref<3x32xf32, #tpu.memory_space<vmem>>, %arg8: memref<1x3x128xf32, #tpu.memory_space<vmem>>) attributes {dimension_semantics = [#tpu.dimension_semantics<parallel>, #tpu.dimension_semantics<parallel>], iteration_bounds = array<i64: 2, 2>, scalar_prefetch = 0 : i64, scratch_operands = 0 : i64, tpu.core_type = #tpu.core_type<tc>, window_params = [{transform_indices = @transform_0, window_bounds = array<i64: 1, 3, 128>}, {transform_indices = @transform_1, window_bounds = array<i64: 1, 32, 1>}, {pipeline_mode = #tpu.pipeline_mode<synchronous>, transform_indices = @transform_2, window_bounds = array<i64: 32, 3>}, {pipeline_mode = #tpu.pipeline_mode<synchronous>, transform_indices = @transform_3, window_bounds = array<i64: 32, 32>}, {pipeline_mode = #tpu.pipeline_mode<synchronous>, transform_indices = @transform_4, window_bounds = array<i64: 32, 1>}, {pipeline_mode = #tpu.pipeline_mode<synchronous>, transform_indices = @transform_5, window_bounds = array<i64: 3, 32>}, {transform_indices = @transform_6, window_bounds = array<i64: 1, 3, 128>}]} {
    %c0 = arith.constant 0 : index
    %c0_0 = arith.constant 0 : index
    %c0_1 = arith.constant 0 : index
    %0 = vector.load %arg2[%c0, %c0_0, %c0_1] : memref<1x3x128xf32, #tpu.memory_space<vmem>>, vector<1x3x128xf32>
    %1 = vector.shape_cast %0 : vector<1x3x128xf32> to vector<3x128xf32>
    %c0_2 = arith.constant 0 : index
    %c0_3 = arith.constant 0 : index
    %2 = vector.load %arg4[%c0_2, %c0_3] : memref<32x3xf32, #tpu.memory_space<vmem>>, vector<32x3xf32>
    %3 = vector.extract_strided_slice %2 {offsets = [0, 0], sizes = [32, 1], strides = [1, 1]} : vector<32x3xf32> to vector<32x1xf32>
    %4 = vector.extract_strided_slice %1 {offsets = [0, 0], sizes = [1, 128], strides = [1, 1]} : vector<3x128xf32> to vector<1x128xf32>
    %5 = vector.broadcast %3 : vector<32x1xf32> to vector<32x128xf32>
    %6 = vector.broadcast %4 : vector<1x128xf32> to vector<32x128xf32>
    %7 = arith.mulf %5, %6 : vector<32x128xf32>
    %8 = vector.extract_strided_slice %2 {offsets = [0, 1], sizes = [32, 1], strides = [1, 1]} : vector<32x3xf32> to vector<32x1xf32>
    %9 = vector.extract_strided_slice %1 {offsets = [1, 0], sizes = [1, 128], strides = [1, 1]} : vector<3x128xf32> to vector<1x128xf32>
    %10 = vector.broadcast %8 : vector<32x1xf32> to vector<32x128xf32>
    %11 = vector.broadcast %9 : vector<1x128xf32> to vector<32x128xf32>
    %12 = arith.mulf %10, %11 : vector<32x128xf32>
    %13 = arith.addf %7, %12 : vector<32x128xf32>
    %14 = vector.extract_strided_slice %2 {offsets = [0, 2], sizes = [32, 1], strides = [1, 1]} : vector<32x3xf32> to vector<32x1xf32>
    %15 = vector.extract_strided_slice %1 {offsets = [2, 0], sizes = [1, 128], strides = [1, 1]} : vector<3x128xf32> to vector<1x128xf32>
    %16 = vector.broadcast %14 : vector<32x1xf32> to vector<32x128xf32>
    %17 = vector.broadcast %15 : vector<1x128xf32> to vector<32x128xf32>
    %18 = arith.mulf %16, %17 : vector<32x128xf32>
    %19 = arith.addf %13, %18 : vector<32x128xf32>
    %c0_4 = arith.constant 0 : index
    %c0_5 = arith.constant 0 : index
    %c0_6 = arith.constant 0 : index
    %20 = vector.load %arg3[%c0_4, %c0_5, %c0_6] : memref<1x32x1xf32, #tpu.memory_space<vmem>>, vector<1x32x1xf32>
    %21 = vector.shape_cast %20 : vector<1x32x1xf32> to vector<32x1xf32>
    %22 = vector.broadcast %21 : vector<32x1xf32> to vector<32x128xf32>
    %23 = arith.addf %19, %22 : vector<32x128xf32>
    %24 = math.tanh %23 : vector<32x128xf32>
    %c0_7 = arith.constant 0 : index
    %c0_8 = arith.constant 0 : index
    %25 = vector.load %arg5[%c0_7, %c0_8] : memref<32x32xf32, #tpu.memory_space<vmem>>, vector<32x32xf32>
    %cst = arith.constant dense<0.000000e+00> : vector<32x128xf32>
    %26 = tpu.matmul %25, %24, %cst {dimension_numbers = #tpu.dot_dimension_numbers<[1], [0], [0], [1], [0, 0, 1, 1], [], []>} : vector<32x32xf32>, vector<32x128xf32>, vector<32x128xf32> -> vector<32x128xf32>
    %c0_9 = arith.constant 0 : index
    %c0_10 = arith.constant 0 : index
    %27 = vector.load %arg6[%c0_9, %c0_10] : memref<32x1xf32, #tpu.memory_space<vmem>>, vector<32x1xf32>
    %28 = vector.broadcast %27 : vector<32x1xf32> to vector<32x128xf32>
    %29 = arith.addf %26, %28 : vector<32x128xf32>
    %30 = math.tanh %29 : vector<32x128xf32>
    %c0_11 = arith.constant 0 : index
    %c0_12 = arith.constant 0 : index
    %31 = vector.load %arg7[%c0_11, %c0_12] : memref<3x32xf32, #tpu.memory_space<vmem>>, vector<3x32xf32>
    %cst_13 = arith.constant dense<0.000000e+00> : vector<3x128xf32>
    %32 = tpu.matmul %31, %30, %cst_13 {dimension_numbers = #tpu.dot_dimension_numbers<[1], [0], [0], [1], [0, 0, 1, 1], [], []>} : vector<3x32xf32>, vector<32x128xf32>, vector<3x128xf32> -> vector<3x128xf32>
    %33 = arith.negf %32 : vector<3x128xf32>
    %34 = math.exp %33 : vector<3x128xf32>
    %cst_14 = arith.constant 1.000000e+00 : f32
    %35 = vector.broadcast %cst_14 : f32 to vector<3x128xf32>
    %36 = arith.addf %35, %34 : vector<3x128xf32>
    %37 = arith.divf %35, %36 : vector<3x128xf32>
    %c0_15 = arith.constant 0 : index
    %c0_16 = arith.constant 0 : index
    %c0_17 = arith.constant 0 : index
    %38 = vector.load %arg8[%c0_15, %c0_16, %c0_17] : memref<1x3x128xf32, #tpu.memory_space<vmem>>, vector<1x3x128xf32>
    %39 = vector.shape_cast %38 : vector<1x3x128xf32> to vector<3x128xf32>
    %40 = vector.shape_cast %37 : vector<3x128xf32> to vector<1x3x128xf32>
    tpu.vector_store %arg8[%c0_15, %c0_16, %c0_17], %40 {strides = array<i32>} : memref<1x3x128xf32, #tpu.memory_space<vmem>>, vector<1x3x128xf32>,
    return
  }
  func.func @transform_0(%arg0: i32, %arg1: i32) -> (i32, i32, i32) {
    %c0_i32 = arith.constant 0 : i32
    %c0_i32_0 = arith.constant 0 : i32
    return %arg0, %c0_i32, %arg1 : i32, i32, i32
  }
  func.func @transform_1(%arg0: i32, %arg1: i32) -> (i32, i32, i32) {
    %c0_i32 = arith.constant 0 : i32
    %c0_i32_0 = arith.constant 0 : i32
    %c0_i32_1 = arith.constant 0 : i32
    return %arg0, %c0_i32, %c0_i32_0 : i32, i32, i32
  }
  func.func @transform_2(%arg0: i32, %arg1: i32) -> (i32, i32) {
    %c0_i32 = arith.constant 0 : i32
    %c0_i32_0 = arith.constant 0 : i32
    %c0_i32_1 = arith.constant 0 : i32
    return %c0_i32, %c0_i32_0 : i32, i32
  }
  func.func @transform_3(%arg0: i32, %arg1: i32) -> (i32, i32) {
    %c0_i32 = arith.constant 0 : i32
    %c0_i32_0 = arith.constant 0 : i32
    %c0_i32_1 = arith.constant 0 : i32
    return %c0_i32, %c0_i32_0 : i32, i32
  }
  func.func @transform_4(%arg0: i32, %arg1: i32) -> (i32, i32) {
    %c0_i32 = arith.constant 0 : i32
    %c0_i32_0 = arith.constant 0 : i32
    %c0_i32_1 = arith.constant 0 : i32
    return %c0_i32, %c0_i32_0 : i32, i32
  }
  func.func @transform_5(%arg0: i32, %arg1: i32) -> (i32, i32) {
    %c0_i32 = arith.constant 0 : i32
    %c0_i32_0 = arith.constant 0 : i32
    %c0_i32_1 = arith.constant 0 : i32
    return %c0_i32, %c0_i32_0 : i32, i32
  }
  func.func @transform_6(%arg0: i32, %arg1: i32) -> (i32, i32, i32) {
    %c0_i32 = arith.constant 0 : i32
    %c0_i32_0 = arith.constant 0 : i32
    return %arg0, %c0_i32, %arg1 : i32, i32, i32
  }
}

</mosaic_0001>

<bundles_post_ra>
// kernel: tpu_custom_call.1
= control target key start
LH: loop header
LB: loop body
LE: loop exit
PB: predicated region body
PF: predicated region fallthrough
CT: control target
= control target key end

     0   :  { %s960_s21 = smov 0   ;;  %s962_s22 = smov 0   ;;  %s1077_s0 = inlined_call_operand.vmem [shape: f32[2,3,256], index: 0, kind: input, shape index: {}]   ;;  %s1078_s1 = inlined_call_operand.vmem [shape: f32[2,32,1], index: 1, kind: input, shape index: {}]   ;;  %s1079_s2 = inlined_call_operand.vmem [shape: f32[32,3], index: 2, kind: input, shape index: {}]   ;;  %s1080_s3 = inlined_call_operand.vmem [shape: f32[32,32], index: 3, kind: input, shape index: {}]   ;;  %s1081_s4 = inlined_call_operand.vmem [shape: f32[32,1], index: 4, kind: input, shape index: {}]   ;;  %s1082_s5 = inlined_call_operand.vmem [shape: f32[3,32], index: 5, kind: input, shape index: {}]   ;;  %s1083_s6 = inlined_call_operand.vmem [shape: f32[2,3,256], index: 6, kind: output, shape index: {}]  }
   0x1   :  { %s964_s23 = smov 0   ;;  %s966_s24 = smov 0  }
   0x2   :  { %s968_s25 = smov 0  }
   0x3 LB: > { %s25_s26 = sadd.s32 1, %s909_s23  ;;  %s28_s27 = sadd.s32 1, %s913_s24  ;;  %s917_s25 = sphi %s968_s25, %s16_s25   ;;  %s913_s24 = sphi %s966_s24, %s1087_s24   ;;  %s909_s23 = sphi %s964_s23, %s1086_s23   ;;  %s905_s22 = sphi %s962_s22, %s1085_s22   ;;  %s901_s21 = sphi %s960_s21, %s1084_s21  }
   0x4   : > { %p26_p0 = scmp.ge.s32.totalorder %s25_s26, 2  ;;  %p737_p1 = scmp.ge.s32.totalorder %s917_s25, 1 }
   0x5   : > { %p241_p2 = scmp.lt.s32.totalorder %s917_s25, 5 }
   0x6   : > { %s1089_s26 = smov (%p26_p0, %s25_s26), 0  ;;  %s1091_s27 = smov (!%p26_p0, %s28_s27), %s913_s24 }
   0x7   : > { %p242_p3 = pnand %p737_p1, %p241_p2  ;;  %p30_p4 = scmp.ge.s32.totalorder %s1091_s27, 2 }
   0x8   : > { %v304_v0 = vld [vmem:[%s1079_s2] sm:$0xff] (!%p242_p3)  ;;  %v919_v1 = vmov (!%p242_p3), 2   ;;  %v920_v2 = vmov (!%p242_p3), 1   ;;  %v306_v3 = vld [vmem:[%s1079_s2 + $0x10] sm:$0xff] (!%p242_p3)  ;;  %v305_v4 = vld [vmem:[%s1079_s2 + $0x8] sm:$0xff] (!%p242_p3)  ;;  %p282_p5 = scmp.lt.s32.totalorder (!%p242_p3), %s905_s22, 1  ;;  %v328_v20 = vlaneseq (!%p242_p3) }
   0x9   : > { %s1093_s27 = smov (%p30_p4, %s1091_s27), 0  ;;  %245 = sbr.rel (%p242_p3) target bundleno = 673 (0x2a1), region = 44 }
   0xa   : > { %852 = vset.pattern.permute.xlu0 (!%p242_p3), %v919_v1  ;;  %851 = vset.pattern.permute.xlu1 (!%p242_p3), %v920_v2  ;;  %v921_v5 = vmov (!%p242_p3), 0   ;;  %v307_v6 = vld [vmem:[%s1079_s2 + $0x18] sm:$0xff] (!%p242_p3)  ;;  %v428_v8 = vld [vmem:[%s1081_s4] sm:$0xff] (!%p242_p3)  ;;  %v430_v9 = vld [vmem:[%s1081_s4 + $0x10] sm:$0xff] (!%p242_p3)  ;;  %vm452_vm0 = vcmask (!%p242_p3), 261120   ;;  %p284_p6 = scmp.lt.s32.totalorder (!%p242_p3), %s901_s21, 1 }
   0xb   : > { %365 = vperm.xlu0 (!%p242_p3), %852, %v304_v0   ;;  %337 = vperm.xlu1 (!%p242_p3), %851, %v304_v0   ;;  %v429_v13 = vld [vmem:[%s1081_s4 + $0x8] sm:$0xff] (!%p242_p3)  ;;  %v431_v14 = vld [vmem:[%s1081_s4 + $0x18] sm:$0xff] (!%p242_p3)  ;;  %v424_v15 = vld [vmem:[%s1080_s3] sm:$0xff] (!%p242_p3)  ;;  %v329_v23 = vshrl.u32 (!%p242_p3), %v328_v20, 7  ;;  %vm923_vm1 = vmmov (!%p242_p3), 0  }
   0xc   : > { %774 = vmatprep.mubr.msk.f32.mxu0 (!%p242_p3), %vm452_vm0, %v424_v15 }
   0xd   : > { %v330_v25 = vsub.s32 (!%p242_p3), 0, %v329_v23  ;;  %v354_v27 = vsub.s32 (!%p242_p3), 1, %v329_v23  ;;  %v382_v29 = vsub.s32 (!%p242_p3), 2, %v329_v23 }
   0xf   : > { %373 = vperm.xlu0 (!%p242_p3), %852, %v306_v3   ;;  %341 = vperm.xlu1 (!%p242_p3), %851, %v305_v4  }
  0x10   : > { %s1095_s22 = smov (!%p282_p5, %s905_s22), 1  ;;  %s1097_s21 = smov (!%p284_p6, %s901_s21), 1 }
  0x11   : > { %s752_s10 = sshll.u32 %s1095_s22, 5  ;;  %s738_s9 = sshll.u32 %s1095_s22, 1 }
  0x12   : > { %s294_s15 = scalar_lea.vmem %s1078_s1, %s752_s10  ;;  %s1033_s10 = sadd.s32 %s738_s9, %s1097_s21 }
  0x13   : > { %856 = vset.pattern.permute.xlu0 %v921_v5  ;;  %853 = vset.pattern.permute.xlu1 %v919_v1  ;;  %v393_v7 = vld [vmem:[%s294_s15 + $0x8] sm:$0xff]  ;;  %v392_v10 = vld [vmem:[%s294_s15] sm:$0xff]  ;;  %v394_v11 = vld [vmem:[%s294_s15 + $0x10] sm:$0xff]  ;;  %s739_s11 = sshll.u32 %s1033_s10, 2 }
  0x14   : > { %310 = vperm.xlu0 %856, %v304_v0   ;;  %369 = vperm.xlu1 %853, %v305_v4   ;;  %v395_v12 = vld [vmem:[%s294_s15 + $0x18] sm:$0xff]  ;;  %s289_s14 = scalar_lea.vmem %s1077_s0, %s739_s11  ;;  %s302_s30 = scalar_lea.vmem %s1083_s6, %s739_s11 }
  0x15   : > { %v303_v28 = vld [vmem:[%s289_s14] sm:$0x7] }
  0x16   : > { %v331_v30 = vrot.slane %v303_v28, %v330_v25  ;;  %v355_v32 = vrot.slane %v303_v28, %v354_v27  ;;  %v383_v35 = vrot.slane %v303_v28, %v382_v29 }
  0x18   : > { %315 = vperm.xlu0 %856, %v305_v4   ;;  %854 = vset.pattern.permute.xlu1 %v921_v5 }
  0x19   : > { %320 = vperm.xlu1 %854, %v306_v3  }
  0x1c   : > { %325 = vperm.xlu0 %856, %v307_v6  }
  0x1d   : > { %855 = vset.pattern.permute.xlu1 %v920_v2 }
  0x1e   : > { %345 = vperm.xlu1 %855, %v306_v3  }
  0x20   : > { %403 = vperm.xlu0 %856, %v393_v7   ;;  %v425_v7 = vld [vmem:[%s1080_s3 + $0x8] sm:$0xff] }
  0x22   : > { %349 = vperm.xlu1 %855, %v307_v6  }
  0x24   : > { %434 = vperm.xlu0 %856, %v428_v8   ;;  %v426_v8 = vld [vmem:[%s1080_s3 + $0x10] sm:$0xff] }
  0x26   : > { %857 = vset.pattern.permute.xlu1 %v919_v1 }
  0x27   : > { %377 = vperm.xlu1 %857, %v307_v6  }
  0x28   : > { %444 = vperm.xlu0 %856, %v430_v9   ;;  %v427_v9 = vld [vmem:[%s1080_s3 + $0x18] sm:$0xff] }
  0x2b   : > { %858 = vset.pattern.permute.xlu1 %v921_v5 }
  0x2c   : > { %398 = vperm.xlu1 %858, %v392_v10   ;;  %v922_v10 = vmov 0.0|0.0  }
  0x2d   : > { %799 = vmatprep.subr.bf16.mxu1 %v922_v10 }
  0x30   : > { %408 = vperm.xlu1 %858, %v394_v11   ;;  %v924_v11 = vmov 0.0  }
  0x31   : > { %788 = vmatprep.mubr.msk.f32.mxu1 %vm923_vm1, %v924_v11 }
  0x34   : > { %413 = vperm.xlu1 %858, %v395_v12  }
  0x38   : > { %439 = vperm.xlu1 %858, %v429_v13  }
  0x3c   : > { %449 = vperm.xlu1 %858, %v431_v14  }
  0x8a   : > { %v338_v16 = vpop.permute.xlu1 %337  ;;  %v366_v17 = vpop.permute.xlu0 %365 }
  0x8b   : > { %v356_v40 = vmul.f32 %v355_v32, %v338_v16  ;;  %v384_v42 = vmul.f32 %v383_v35, %v366_v17 }
  0x8e   : > { %v342_v18 = vpop.permute.xlu1 %341  ;;  %v374_v19 = vpop.permute.xlu0 %373 }
  0x8f   : > { %v357_v36 = vmul.f32 %v355_v32, %v342_v18  ;;  %v386_v56 = vmul.f32 %v383_v35, %v374_v19 }
  0x93   : > { %v370_v21 = vpop.permute.xlu1 %369  ;;  %v311_v22 = vpop.permute.xlu0 %310 }
  0x94   : > { %v332_v38 = vmul.f32 %v331_v30, %v311_v22  ;;  %v385_v41 = vmul.f32 %v383_v35, %v370_v21 }
  0x96   : > { %v360_v43 = vadd.f32 %v356_v40, %v332_v38 }
  0x97   : > { %v316_v26 = vpop.permute.xlu0 %315 }
  0x98   : > { %v321_v24 = vpop.permute.xlu1 %320  ;;  %v333_v33 = vmul.f32 %v331_v30, %v316_v26  ;;  %v388_v50 = vadd.f32 %v384_v42, %v360_v43 }
  0x99   : > { %v334_v48 = vmul.f32 %v331_v30, %v321_v24 }
  0x9a   : > { %v361_v39 = vadd.f32 %v357_v36, %v333_v33 }
  0x9b   : > { %v326_v34 = vpop.permute.xlu0 %325 }
  0x9c   : > { %v389_v47 = vadd.f32 %v385_v41, %v361_v39  ;;  %v335_v53 = vmul.f32 %v331_v30, %v326_v34  ;;  %v554_v30 = vld [vmem:[%s1082_s5] sm:$0x7] }
  0x9d   : > { %v346_v31 = vpop.permute.xlu1 %345 }
  0x9e   : > { %v358_v46 = vmul.f32 %v355_v32, %v346_v31 }
  0x9f   : > { %v404_v44 = vpop.permute.xlu0 %403 }
  0xa0   : > { %v417_v49 = vadd.f32 %v404_v44, %v389_v47  ;;  %v362_v51 = vadd.f32 %v358_v46, %v334_v48 }
  0xa1   : > { %v350_v37 = vpop.permute.xlu1 %349 }
  0xa2   : > { %v359_v54 = vmul.f32 %v355_v32, %v350_v37  ;;  %859 = vtanh.f32 %v417_v49  ;;  %v390_v59 = vadd.f32 %v386_v56, %v362_v51 }
  0xa3   : > { %v435_v13 = vpop.permute.xlu0 %434 }
  0xa4   : > { %v363_v60 = vadd.f32 %v359_v54, %v335_v53 }
  0xa6   : > { %v378_v45 = vpop.permute.xlu1 %377 }
  0xa7   : > { %v387_v57 = vmul.f32 %v383_v35, %v378_v45  ;;  %v445_v20 = vpop.permute.xlu0 %444 }
  0xa9   : > { %v391_v62 = vadd.f32 %v387_v57, %v363_v60 }
  0xab   : > { %v399_v52 = vpop.permute.xlu1 %398 }
  0xac   : > { %v416_v55 = vadd.f32 %v399_v52, %v388_v50  ;;  %v860_v1 = vpop.eup %859 }
  0xae   : > { %861 = vtanh.f32 %v416_v55 }
  0xaf   : > { %v409_v58 = vpop.permute.xlu1 %408 }
  0xb0   : > { %v418_v61 = vadd.f32 %v409_v58, %v390_v59 }
  0xb2   : > { %863 = vtanh.f32 %v418_v61 }
  0xb3   : > { %v414_v63 = vpop.permute.xlu1 %413 }
  0xb4   : > { %v419_v0 = vadd.f32 %v414_v63, %v391_v62 }
  0xb6   : > { %865 = vtanh.f32 %v419_v0 }
  0xb7   : > { %v440_v12 = vpop.permute.xlu1 %439 }
  0xb8   : > { %v862_v2 = vpop.eup %861 }
  0xb9   : > { %v791_v3 = vpack.c.bf16 %v860_v1, %v862_v2 }
  0xbb   : > { %792 = vmatprep.subr.bf16.mxu0 %v791_v3  ;;  %v450_v18 = vpop.permute.xlu1 %449 }
  0xbc   : > { %794 = vmatpush3.bf16.msra.mxu0 %v791_v3  ;;  %v864_v4 = vpop.eup %863 }
  0xc0   : > { %v866_v5 = vpop.eup %865 }
  0xc1   : > { %v795_v6 = vpack.c.bf16 %v866_v5, %v864_v4 }
  0xc3   : > { %796 = vmatprep.subr.bf16.mxu0 %v795_v6 }
  0xc4   : > { %798 = vmatpush3.bf16.msra.mxu0 %v795_v6 }
  0xc7   : > { %775 = vmatmul.mubr.msk.f32.vlgmr.msra.gmra.mrb[0].mxu0 %vm452_vm0, %v425_v7 }
  0xc8   : > { %777 = vmatprep.mubr.msk.f32.mxu0 %vm452_vm0, %v426_v8 }
  0xcb   : > { %778 = vmatmul.mubr.msk.f32.gmra.mrb[2].mxu0 %vm452_vm0, %v427_v9 }
 0x19a   : > { %v776_v14 = vpop.f32.mrb[0].mxu0 }
 0x19b   : > { %v537_v15 = vadd.f32 %v776_v14, %v440_v12  ;;  %v531_v16 = vpop.f32.mrb[1].mxu0 }
 0x19c   : > { %v532_v17 = vadd.f32 %v531_v16, %v435_v13 }
 0x19d   : > { %867 = vtanh.f32 %v537_v15 }
 0x19e   : > { %869 = vtanh.f32 %v532_v17  ;;  %v779_v19 = vpop.f32.mrb[2].mxu0 }
 0x19f   : > { %v547_v21 = vadd.f32 %v779_v19, %v450_v18  ;;  %v541_v22 = vpop.f32.mrb[3].mxu0 }
 0x1a0   : > { %v542_v23 = vadd.f32 %v541_v22, %v445_v20 }
 0x1a1   : > { %871 = vtanh.f32 %v547_v21 }
 0x1a2   : > { %873 = vtanh.f32 %v542_v23 }
 0x1a7   : > { %v868_v24 = vpop.eup %867 }
 0x1a8   : > { %v870_v25 = vpop.eup %869 }
 0x1a9   : > { %v800_v26 = vpack.c.bf16 %v868_v24, %v870_v25 }
 0x1ab   : > { %v872_v27 = vpop.eup %871  ;;  %801 = vmatpush3.bf16.msra.mxu1 %v800_v26 }
 0x1ac   : > { %v874_v28 = vpop.eup %873  ;;  %802 = vmatprep.subr.bf16.mxu1 %v922_v10 }
 0x1ad   : > { %v803_v29 = vpack.c.bf16 %v872_v27, %v874_v28 }
 0x1af   : > { %804 = vmatpush3.bf16.msra.mxu1 %v803_v29 }
 0x1b2   : > { %789 = vmatmul.mubr.msk.f32.vlgmr.msra.gmra.mrb[0].mxu1 %vm452_vm0, %v554_v30 }
 0x285   : > { %v624_v31 = vpop.f32.mrb[0].mxu1 }
 0x286   : > { %v749_v32 = vmul.f32 -1.442695, %v624_v31  ;;  %v790_v33 = vpop.f32.mrb[1].mxu1 }
 0x288   : > { %875 = vpow2.f32 %v749_v32 }
 0x292   : > { %v876_v34 = vpop.eup %875 }
 0x293   : > { %v631_v35 = vadd.f32 1.0, %v876_v34 }
 0x295   : > { %877 = vrcp.f32 %v631_v35 }
 0x29f   : > { %v878_v36 = vpop.eup %877 }
 0x2a0   : > { %634 = vst [vmem:[%s302_s30] sm:$0x7] %v878_v36 }
 0x2a1 PF: > { %s16_s25 = sadd.s32 1, %s917_s25   ;;  %s1084_s21 = smov %s909_s23 }
 0x2a2   : > { %p13_p7 = scmp.ge.s32.totalorder %s16_s25, 6   ;;  %s1085_s22 = smov %s913_s24 }
 0x2a3   : > { %s1086_s23 = smov %s1089_s26  ;;  %s1087_s24 = smov %s1093_s27 }
 0x2a4   :  { %15 = sbr.rel (!%p13_p7) target bundleno = 3 (0x3), region = 77 }

</bundles_post_ra>
